<compile_context>
chip_gen: v5e
topology: v5e:2x2
jax: 0.10.0
libtpu: 0.0.40
codegen_flags: <defaults>
</compile_context>

<pallas_src>
import jax
import jax.numpy as jnp
import numpy as np
from jax import lax
from jax.experimental import pallas as pl
from jax.experimental.pallas import tpu as pltpu


# ----------------------------- kernel bodies ------------------------------- #
def _run_chunk(i_app_ref, hout_ref, h0, a, bm, gmax, scol, tt):
    """Run tt recurrence steps on VMEM-resident data; return final hidden."""
    def body(t, h):
        hG = jnp.dot(h, gmax, preferred_element_type=jnp.float32)      # MXU
        h_new = a * h + bm + i_app_ref[t] + \
            jnp.clip(h, 0.0, 1.0) * (scol - hG)                        # VPU
        if hout_ref is not None:
            hout_ref[t] = h_new                                        # stream
        return h_new
    return lax.fori_loop(0, tt, body, h0, unroll=True)


def sns_seq_kernel(i_app_ref, h0_ref, a_ref, bm_ref, gmax_ref, scol_ref,
                   hout_ref, h_scratch):
    """Tt timesteps per grid step; hidden carried in VMEM scratch; per-step
    hidden states streamed to the (T,B,S) output."""
    @pl.when(pl.program_id(0) == 0)
    def _():
        h_scratch[...] = h0_ref[...]

    tt = i_app_ref.shape[0]
    h_last = _run_chunk(i_app_ref, hout_ref, h_scratch[...],
                        a_ref[...], bm_ref[...], gmax_ref[...],
                        scol_ref[...], tt)
    h_scratch[...] = h_last                 # carry to next chunk


def sns_final_kernel(i_app_ref, h0_ref, a_ref, bm_ref, gmax_ref, scol_ref,
                     hlast_ref, h_scratch):
    """Same recurrence, but only the final hidden state is written out."""
    @pl.when(pl.program_id(0) == 0)
    def _():
        h_scratch[...] = h0_ref[...]

    tt = i_app_ref.shape[0]
    h_last = _run_chunk(i_app_ref, None, h_scratch[...],
                        a_ref[...], bm_ref[...], gmax_ref[...],
                        scol_ref[...], tt)
    h_scratch[...] = h_last
    hlast_ref[...] = h_last                 # resident output, last write wins


# ----------------------------- wrappers ------------------------------------ #
def clamp_params(Gm, bm, Gmax, Esyn):
    """Replicates SNSCell.forward's in-place parameter clamping side effect."""
    return (jnp.clip(Gm, 0.01, 1.0),
            jnp.clip(bm, -1.0, 1.0),
            jnp.clip(Gmax, 0.0, 1.0),
            jnp.clip(Esyn, -3.0, 3.0))


def _precompute(Gm, bm, Gmax, Esyn, S):
    """Hoisted, time-invariant parameter prep (runs once per sequence)."""
    gm_c, bm_c, gmax_c, esyn_c = clamp_params(
        Gm.astype(jnp.float32), bm.astype(jnp.float32),
        Gmax.astype(jnp.float32), Esyn.astype(jnp.float32))
    a = (1.0 - gm_c).reshape(1, S)                              # 1 - Gm
    scol = jnp.sum(gmax_c * esyn_c, axis=0, keepdims=True)      # (1, S)
    return a, bm_c.reshape(1, S), gmax_c, scol


def _pick_time_chunk(T, B, S, budget_bytes=4 << 20, max_unrolled=8):
    """Largest divisor of T such that the (double-buffered) i_app/hout chunk
    stays within budget and the in-kernel loop stays fully unrollable."""
    per_step = 2 * B * S * 4                       # i_app + hout slab, f32
    cap = max(1, min(max_unrolled, budget_bytes // (2 * per_step)))
    tt = 1
    for d in range(1, T + 1):
        if T % d == 0 and d <= cap:
            tt = d
    return tt


def _sns_call(kernel, out_shape, out_spec, i_app_seq, hidden, params, tt):
    T, B, S = i_app_seq.shape
    a, bm2, gmax_c, scol = params
    return pl.pallas_call(
        kernel,
        out_shape=out_shape,
        grid_spec=pltpu.PrefetchScalarGridSpec(
            num_scalar_prefetch=0,
            grid=(T // tt,),
            in_specs=[
                pl.BlockSpec((tt, B, S), lambda c: (c, 0, 0)),   # i_app chunk
                pl.BlockSpec((B, S), lambda c: (0, 0)),          # h0 (resident)
                pl.BlockSpec((1, S), lambda c: (0, 0)),          # a = 1-Gm
                pl.BlockSpec((1, S), lambda c: (0, 0)),          # bm
                pl.BlockSpec((S, S), lambda c: (0, 0)),          # Gmax
                pl.BlockSpec((1, S), lambda c: (0, 0)),          # s_col
            ],
            out_specs=out_spec,
            scratch_shapes=[pltpu.VMEM((B, S), jnp.float32)],    # hidden carry
        ),
        compiler_params=pltpu.CompilerParams(
            dimension_semantics=("arbitrary",),    # sequential recurrence
            vmem_limit_bytes=32 * 1024 * 1024),
    )(i_app_seq.astype(jnp.float32), hidden.astype(jnp.float32),
      a, bm2, gmax_c, scol)


def sns_cell_scan(i_app_seq, hidden, Gm, bm, Gmax, Esyn):
    """Run T recurrence steps; returns all per-step hidden states (T, B, S)."""
    T, B, S = i_app_seq.shape
    params = _precompute(Gm, bm, Gmax, Esyn, S)
    tt = _pick_time_chunk(T, B, S)
    return _sns_call(sns_seq_kernel,
                     jax.ShapeDtypeStruct((T, B, S), jnp.float32),
                     pl.BlockSpec((tt, B, S), lambda c: (c, 0, 0)),
                     i_app_seq, hidden, params, tt)


def sns_cell_final(i_app_seq, hidden, Gm, bm, Gmax, Esyn):
    """Run T recurrence steps; returns only the final hidden state (B, S)."""
    T, B, S = i_app_seq.shape
    params = _precompute(Gm, bm, Gmax, Esyn, S)
    tt = _pick_time_chunk(T, B, S)
    return _sns_call(sns_final_kernel,
                     jax.ShapeDtypeStruct((B, S), jnp.float32),
                     pl.BlockSpec((B, S), lambda c: (0, 0)),
                     i_app_seq, hidden, params, tt)


def sns_cell_forward(i_app, hidden, Gm, bm, Gmax, Esyn):
    """Single-step API matching SNSCell.forward: returns (h_new, h_new)."""
    new_hidden = sns_cell_final(i_app[None], hidden, Gm, bm, Gmax, Esyn)
    return new_hidden, new_hidden


# ----------------------------- reference ----------------------------------- #
def sns_cell_reference(i_app, hidden, Gm, bm, Gmax, Esyn):
    """Pure-JAX transcription of the PyTorch forward (single step)."""
    Gm = jnp.clip(Gm, 0.01, 1.0)
    bm = jnp.clip(bm, -1.0, 1.0)
    Gmax = jnp.clip(Gmax, 0.0, 1.0)
    Esyn = jnp.clip(Esyn, -3.0, 3.0)
    size = hidden.shape[1]
    step = -Gm * hidden + bm + i_app
    rrh = jnp.broadcast_to(hidden[:, :, None], (*hidden.shape, size))
    diff = Esyn - rrh
    diag = jnp.clip(rrh, 0.0, 1.0) * jnp.eye(size, dtype=hidden.dtype)
    diff = jnp.matmul(diff, diag)
    diff = diff * Gmax
    diff = jnp.sum(diff, axis=1)
    return hidden + step + diff


# ----------------------------- test ----------------------------------------- #
if __name__ == "__main__":
    B, S, T = 8, 128, 16   # batch, neuron count ("size"), sequence length
    key = jax.random.PRNGKey(0)
    k1, k2, k3, k4, k5, k6 = jax.random.split(key, 6)

    i_app_seq = jax.random.normal(k1, (T, B, S), jnp.float32) * 0.05
    hidden0 = jax.random.normal(k2, (B, S), jnp.float32) * 0.1
    Gm = jax.random.uniform(k3, (S,), jnp.float32)
    bm = jax.random.uniform(k4, (S,), jnp.float32) * 0.2
    # Weak (O(1/S)) synaptic coupling keeps the recurrence contractive, so the
    # FP-reassociated kernel and the naive reference stay within tolerance.
    Gmax = jax.random.uniform(k5, (S, S), jnp.float32) * (2.0 / S)
    Esyn = jax.random.uniform(k6, (S, S), jnp.float32, minval=-1.0, maxval=1.0)

    # --- fused multi-step kernel (2 chunks of 8 steps) vs unrolled reference ---
    hseq = jax.block_until_ready(
        sns_cell_scan(i_app_seq, hidden0, Gm, bm, Gmax, Esyn))

    h_ref = hidden0
    ref_states = []
    for t in range(T):
        h_ref = sns_cell_reference(i_app_seq[t], h_ref, Gm, bm, Gmax, Esyn)
        ref_states.append(h_ref)
    ref_seq = jax.block_until_ready(jnp.stack(ref_states, axis=0))

    np.testing.assert_allclose(np.asarray(hseq), np.asarray(ref_seq),
                               rtol=5e-5, atol=5e-5)

    # --- final-state-only variant matches the last streamed state ---
    h_last = jax.block_until_ready(
        sns_cell_final(i_app_seq, hidden0, Gm, bm, Gmax, Esyn))
    np.testing.assert_allclose(np.asarray(h_last), np.asarray(hseq[-1]),
                               rtol=1e-6, atol=1e-6)

    # --- single-step API (the actual SNSCell.forward semantics), strict ---
    out, out2 = sns_cell_forward(i_app_seq[0], hidden0, Gm, bm, Gmax, Esyn)
    out = jax.block_until_ready(out)
    np.testing.assert_allclose(np.asarray(out), np.asarray(ref_seq[0]),
                               rtol=1e-5, atol=1e-5)
    assert out is out2  # forward returns the same tensor twice

    print("KERNEL_OK")
</pallas_src>

<mosaic_0001>
module attributes {stable_mosaic.version = 11 : i64} {
  func.func @sns_seq_kernel(%arg0: i32, %arg1: memref<8x8x128xf32, #tpu.memory_space<vmem>>, %arg2: memref<8x128xf32, #tpu.memory_space<vmem>>, %arg3: memref<1x128xf32, #tpu.memory_space<vmem>>, %arg4: memref<1x128xf32, #tpu.memory_space<vmem>>, %arg5: memref<128x128xf32, #tpu.memory_space<vmem>>, %arg6: memref<1x128xf32, #tpu.memory_space<vmem>>, %arg7: memref<8x8x128xf32, #tpu.memory_space<vmem>>, %arg8: memref<8x128xf32, #tpu.memory_space<vmem>>) attributes {dimension_semantics = [#tpu.dimension_semantics<arbitrary>], iteration_bounds = array<i64: 2>, scalar_prefetch = 0 : i64, scratch_operands = 1 : i64, tpu.core_type = #tpu.core_type<tc>, window_params = [{transform_indices = @transform_0, window_bounds = array<i64: 8, 8, 128>}, {pipeline_mode = #tpu.pipeline_mode<synchronous>, transform_indices = @transform_1, window_bounds = array<i64: 8, 128>}, {pipeline_mode = #tpu.pipeline_mode<synchronous>, transform_indices = @transform_2, window_bounds = array<i64: 1, 128>}, {pipeline_mode = #tpu.pipeline_mode<synchronous>, transform_indices = @transform_3, window_bounds = array<i64: 1, 128>}, {pipeline_mode = #tpu.pipeline_mode<synchronous>, transform_indices = @transform_4, window_bounds = array<i64: 128, 128>}, {pipeline_mode = #tpu.pipeline_mode<synchronous>, transform_indices = @transform_5, window_bounds = array<i64: 1, 128>}, {transform_indices = @transform_6, window_bounds = array<i64: 8, 8, 128>}]} {
    %c0_i32 = arith.constant 0 : i32
    %0 = arith.cmpi eq, %arg0, %c0_i32 : i32
    %1 = arith.extui %0 : i1 to i32
    %c0_i32_0 = arith.constant 0 : i32
    %2 = arith.cmpi ne, %1, %c0_i32_0 : i32
    scf.if %2 {
      %c0_68 = arith.constant 0 : index
      %c0_69 = arith.constant 0 : index
      %177 = vector.load %arg2[%c0_68, %c0_69] : memref<8x128xf32, #tpu.memory_space<vmem>>, vector<8x128xf32>
      %c0_70 = arith.constant 0 : index
      %c0_71 = arith.constant 0 : index
      %178 = vector.load %arg8[%c0_70, %c0_71] : memref<8x128xf32, #tpu.memory_space<vmem>>, vector<8x128xf32>
      tpu.vector_store %arg8[%c0_70, %c0_71], %177 {strides = array<i32>} : memref<8x128xf32, #tpu.memory_space<vmem>>, vector<8x128xf32>,
    } else {
    }
    %c0 = arith.constant 0 : index
    %c0_1 = arith.constant 0 : index
    %3 = vector.load %arg8[%c0, %c0_1] : memref<8x128xf32, #tpu.memory_space<vmem>>, vector<8x128xf32>
    %c0_2 = arith.constant 0 : index
    %c0_3 = arith.constant 0 : index
    %4 = vector.load %arg3[%c0_2, %c0_3] : memref<1x128xf32, #tpu.memory_space<vmem>>, vector<1x128xf32>
    %c0_4 = arith.constant 0 : index
    %c0_5 = arith.constant 0 : index
    %5 = vector.load %arg4[%c0_4, %c0_5] : memref<1x128xf32, #tpu.memory_space<vmem>>, vector<1x128xf32>
    %c0_6 = arith.constant 0 : index
    %c0_7 = arith.constant 0 : index
    %6 = vector.load %arg5[%c0_6, %c0_7] : memref<128x128xf32, #tpu.memory_space<vmem>>, vector<128x128xf32>
    %c0_8 = arith.constant 0 : index
    %c0_9 = arith.constant 0 : index
    %7 = vector.load %arg6[%c0_8, %c0_9] : memref<1x128xf32, #tpu.memory_space<vmem>>, vector<1x128xf32>
    %c0_i32_10 = arith.constant 0 : i32
    %cst = arith.constant dense<0.000000e+00> : vector<8x128xf32>
    %8 = tpu.matmul %3, %6, %cst {dimension_numbers = #tpu.dot_dimension_numbers<[1], [0], [0], [1], [0, 0, 1, 1], [], []>} : vector<8x128xf32>, vector<128x128xf32>, vector<8x128xf32> -> vector<8x128xf32>
    %9 = vector.broadcast %4 : vector<1x128xf32> to vector<8x128xf32>
    %10 = arith.mulf %9, %3 : vector<8x128xf32>
    %11 = vector.broadcast %5 : vector<1x128xf32> to vector<8x128xf32>
    %12 = arith.addf %10, %11 : vector<8x128xf32>
    %13 = arith.index_cast %c0_i32_10 : i32 to index
    %c0_11 = arith.constant 0 : index
    %c0_12 = arith.constant 0 : index
    %14 = vector.load %arg1[%13, %c0_11, %c0_12] : memref<8x8x128xf32, #tpu.memory_space<vmem>>, vector<1x8x128xf32>
    %15 = vector.shape_cast %14 : vector<1x8x128xf32> to vector<8x128xf32>
    %16 = arith.addf %12, %15 : vector<8x128xf32>
    %cst_13 = arith.constant 0.000000e+00 : f32
    %cst_14 = arith.constant 1.000000e+00 : f32
    %17 = vector.broadcast %cst_13 : f32 to vector<8x128xf32>
    %18 = arith.maximumf %17, %3 : vector<8x128xf32>
    %19 = vector.broadcast %cst_14 : f32 to vector<8x128xf32>
    %20 = arith.minimumf %19, %18 : vector<8x128xf32>
    %21 = vector.broadcast %7 : vector<1x128xf32> to vector<8x128xf32>
    %22 = arith.subf %21, %8 : vector<8x128xf32>
    %23 = arith.mulf %20, %22 : vector<8x128xf32>
    %24 = arith.addf %16, %23 : vector<8x128xf32>
    %25 = arith.index_cast %c0_i32_10 : i32 to index
    %c0_15 = arith.constant 0 : index
    %c0_16 = arith.constant 0 : index
    %26 = vector.load %arg7[%25, %c0_15, %c0_16] : memref<8x8x128xf32, #tpu.memory_space<vmem>>, vector<1x8x128xf32>
    %27 = vector.shape_cast %26 : vector<1x8x128xf32> to vector<8x128xf32>
    %28 = vector.shape_cast %24 : vector<8x128xf32> to vector<1x8x128xf32>
    tpu.vector_store %arg7[%25, %c0_15, %c0_16], %28 {strides = array<i32>} : memref<8x8x128xf32, #tpu.memory_space<vmem>>, vector<1x8x128xf32>,
    %c1_i32 = arith.constant 1 : i32
    %cst_17 = arith.constant dense<0.000000e+00> : vector<8x128xf32>
    %29 = tpu.matmul %24, %6, %cst_17 {dimension_numbers = #tpu.dot_dimension_numbers<[1], [0], [0], [1], [0, 0, 1, 1], [], []>} : vector<8x128xf32>, vector<128x128xf32>, vector<8x128xf32> -> vector<8x128xf32>
    %30 = vector.broadcast %4 : vector<1x128xf32> to vector<8x128xf32>
    %31 = arith.mulf %30, %24 : vector<8x128xf32>
    %32 = vector.broadcast %5 : vector<1x128xf32> to vector<8x128xf32>
    %33 = arith.addf %31, %32 : vector<8x128xf32>
    %34 = arith.index_cast %c1_i32 : i32 to index
    %c0_18 = arith.constant 0 : index
    %c0_19 = arith.constant 0 : index
    %35 = vector.load %arg1[%34, %c0_18, %c0_19] : memref<8x8x128xf32, #tpu.memory_space<vmem>>, vector<1x8x128xf32>
    %36 = vector.shape_cast %35 : vector<1x8x128xf32> to vector<8x128xf32>
    %37 = arith.addf %33, %36 : vector<8x128xf32>
    %cst_20 = arith.constant 0.000000e+00 : f32
    %cst_21 = arith.constant 1.000000e+00 : f32
    %38 = vector.broadcast %cst_20 : f32 to vector<8x128xf32>
    %39 = arith.maximumf %38, %24 : vector<8x128xf32>
    %40 = vector.broadcast %cst_21 : f32 to vector<8x128xf32>
    %41 = arith.minimumf %40, %39 : vector<8x128xf32>
    %42 = vector.broadcast %7 : vector<1x128xf32> to vector<8x128xf32>
    %43 = arith.subf %42, %29 : vector<8x128xf32>
    %44 = arith.mulf %41, %43 : vector<8x128xf32>
    %45 = arith.addf %37, %44 : vector<8x128xf32>
    %46 = arith.index_cast %c1_i32 : i32 to index
    %c0_22 = arith.constant 0 : index
    %c0_23 = arith.constant 0 : index
    %47 = vector.load %arg7[%46, %c0_22, %c0_23] : memref<8x8x128xf32, #tpu.memory_space<vmem>>, vector<1x8x128xf32>
    %48 = vector.shape_cast %47 : vector<1x8x128xf32> to vector<8x128xf32>
    %49 = vector.shape_cast %45 : vector<8x128xf32> to vector<1x8x128xf32>
    tpu.vector_store %arg7[%46, %c0_22, %c0_23], %49 {strides = array<i32>} : memref<8x8x128xf32, #tpu.memory_space<vmem>>, vector<1x8x128xf32>,
    %c2_i32 = arith.constant 2 : i32
    %cst_24 = arith.constant dense<0.000000e+00> : vector<8x128xf32>
    %50 = tpu.matmul %45, %6, %cst_24 {dimension_numbers = #tpu.dot_dimension_numbers<[1], [0], [0], [1], [0, 0, 1, 1], [], []>} : vector<8x128xf32>, vector<128x128xf32>, vector<8x128xf32> -> vector<8x128xf32>
    %51 = vector.broadcast %4 : vector<1x128xf32> to vector<8x128xf32>
    %52 = arith.mulf %51, %45 : vector<8x128xf32>
    %53 = vector.broadcast %5 : vector<1x128xf32> to vector<8x128xf32>
    %54 = arith.addf %52, %53 : vector<8x128xf32>
    %55 = arith.index_cast %c2_i32 : i32 to index
    %c0_25 = arith.constant 0 : index
    %c0_26 = arith.constant 0 : index
    %56 = vector.load %arg1[%55, %c0_25, %c0_26] : memref<8x8x128xf32, #tpu.memory_space<vmem>>, vector<1x8x128xf32>
    %57 = vector.shape_cast %56 : vector<1x8x128xf32> to vector<8x128xf32>
    %58 = arith.addf %54, %57 : vector<8x128xf32>
    %cst_27 = arith.constant 0.000000e+00 : f32
    %cst_28 = arith.constant 1.000000e+00 : f32
    %59 = vector.broadcast %cst_27 : f32 to vector<8x128xf32>
    %60 = arith.maximumf %59, %45 : vector<8x128xf32>
    %61 = vector.broadcast %cst_28 : f32 to vector<8x128xf32>
    %62 = arith.minimumf %61, %60 : vector<8x128xf32>
    %63 = vector.broadcast %7 : vector<1x128xf32> to vector<8x128xf32>
    %64 = arith.subf %63, %50 : vector<8x128xf32>
    %65 = arith.mulf %62, %64 : vector<8x128xf32>
    %66 = arith.addf %58, %65 : vector<8x128xf32>
    %67 = arith.index_cast %c2_i32 : i32 to index
    %c0_29 = arith.constant 0 : index
    %c0_30 = arith.constant 0 : index
    %68 = vector.load %arg7[%67, %c0_29, %c0_30] : memref<8x8x128xf32, #tpu.memory_space<vmem>>, vector<1x8x128xf32>
    %69 = vector.shape_cast %68 : vector<1x8x128xf32> to vector<8x128xf32>
    %70 = vector.shape_cast %66 : vector<8x128xf32> to vector<1x8x128xf32>
    tpu.vector_store %arg7[%67, %c0_29, %c0_30], %70 {strides = array<i32>} : memref<8x8x128xf32, #tpu.memory_space<vmem>>, vector<1x8x128xf32>,
    %c3_i32 = arith.constant 3 : i32
    %cst_31 = arith.constant dense<0.000000e+00> : vector<8x128xf32>
    %71 = tpu.matmul %66, %6, %cst_31 {dimension_numbers = #tpu.dot_dimension_numbers<[1], [0], [0], [1], [0, 0, 1, 1], [], []>} : vector<8x128xf32>, vector<128x128xf32>, vector<8x128xf32> -> vector<8x128xf32>
    %72 = vector.broadcast %4 : vector<1x128xf32> to vector<8x128xf32>
    %73 = arith.mulf %72, %66 : vector<8x128xf32>
    %74 = vector.broadcast %5 : vector<1x128xf32> to vector<8x128xf32>
    %75 = arith.addf %73, %74 : vector<8x128xf32>
    %76 = arith.index_cast %c3_i32 : i32 to index
    %c0_32 = arith.constant 0 : index
    %c0_33 = arith.constant 0 : index
    %77 = vector.load %arg1[%76, %c0_32, %c0_33] : memref<8x8x128xf32, #tpu.memory_space<vmem>>, vector<1x8x128xf32>
    %78 = vector.shape_cast %77 : vector<1x8x128xf32> to vector<8x128xf32>
    %79 = arith.addf %75, %78 : vector<8x128xf32>
    %cst_34 = arith.constant 0.000000e+00 : f32
    %cst_35 = arith.constant 1.000000e+00 : f32
    %80 = vector.broadcast %cst_34 : f32 to vector<8x128xf32>
    %81 = arith.maximumf %80, %66 : vector<8x128xf32>
    %82 = vector.broadcast %cst_35 : f32 to vector<8x128xf32>
    %83 = arith.minimumf %82, %81 : vector<8x128xf32>
    %84 = vector.broadcast %7 : vector<1x128xf32> to vector<8x128xf32>
    %85 = arith.subf %84, %71 : vector<8x128xf32>
    %86 = arith.mulf %83, %85 : vector<8x128xf32>
    %87 = arith.addf %79, %86 : vector<8x128xf32>
    %88 = arith.index_cast %c3_i32 : i32 to index
    %c0_36 = arith.constant 0 : index
    %c0_37 = arith.constant 0 : index
    %89 = vector.load %arg7[%88, %c0_36, %c0_37] : memref<8x8x128xf32, #tpu.memory_space<vmem>>, vector<1x8x128xf32>
    %90 = vector.shape_cast %89 : vector<1x8x128xf32> to vector<8x128xf32>
    %91 = vector.shape_cast %87 : vector<8x128xf32> to vector<1x8x128xf32>
    tpu.vector_store %arg7[%88, %c0_36, %c0_37], %91 {strides = array<i32>} : memref<8x8x128xf32, #tpu.memory_space<vmem>>, vector<1x8x128xf32>,
    %c4_i32 = arith.constant 4 : i32
    %cst_38 = arith.constant dense<0.000000e+00> : vector<8x128xf32>
    %92 = tpu.matmul %87, %6, %cst_38 {dimension_numbers = #tpu.dot_dimension_numbers<[1], [0], [0], [1], [0, 0, 1, 1], [], []>} : vector<8x128xf32>, vector<128x128xf32>, vector<8x128xf32> -> vector<8x128xf32>
    %93 = vector.broadcast %4 : vector<1x128xf32> to vector<8x128xf32>
    %94 = arith.mulf %93, %87 : vector<8x128xf32>
    %95 = vector.broadcast %5 : vector<1x128xf32> to vector<8x128xf32>
    %96 = arith.addf %94, %95 : vector<8x128xf32>
    %97 = arith.index_cast %c4_i32 : i32 to index
    %c0_39 = arith.constant 0 : index
    %c0_40 = arith.constant 0 : index
    %98 = vector.load %arg1[%97, %c0_39, %c0_40] : memref<8x8x128xf32, #tpu.memory_space<vmem>>, vector<1x8x128xf32>
    %99 = vector.shape_cast %98 : vector<1x8x128xf32> to vector<8x128xf32>
    %100 = arith.addf %96, %99 : vector<8x128xf32>
    %cst_41 = arith.constant 0.000000e+00 : f32
    %cst_42 = arith.constant 1.000000e+00 : f32
    %101 = vector.broadcast %cst_41 : f32 to vector<8x128xf32>
    %102 = arith.maximumf %101, %87 : vector<8x128xf32>
    %103 = vector.broadcast %cst_42 : f32 to vector<8x128xf32>
    %104 = arith.minimumf %103, %102 : vector<8x128xf32>
    %105 = vector.broadcast %7 : vector<1x128xf32> to vector<8x128xf32>
    %106 = arith.subf %105, %92 : vector<8x128xf32>
    %107 = arith.mulf %104, %106 : vector<8x128xf32>
    %108 = arith.addf %100, %107 : vector<8x128xf32>
    %109 = arith.index_cast %c4_i32 : i32 to index
    %c0_43 = arith.constant 0 : index
    %c0_44 = arith.constant 0 : index
    %110 = vector.load %arg7[%109, %c0_43, %c0_44] : memref<8x8x128xf32, #tpu.memory_space<vmem>>, vector<1x8x128xf32>
    %111 = vector.shape_cast %110 : vector<1x8x128xf32> to vector<8x128xf32>
    %112 = vector.shape_cast %108 : vector<8x128xf32> to vector<1x8x128xf32>
    tpu.vector_store %arg7[%109, %c0_43, %c0_44], %112 {strides = array<i32>} : memref<8x8x128xf32, #tpu.memory_space<vmem>>, vector<1x8x128xf32>,
    %c5_i32 = arith.constant 5 : i32
    %cst_45 = arith.constant dense<0.000000e+00> : vector<8x128xf32>
    %113 = tpu.matmul %108, %6, %cst_45 {dimension_numbers = #tpu.dot_dimension_numbers<[1], [0], [0], [1], [0, 0, 1, 1], [], []>} : vector<8x128xf32>, vector<128x128xf32>, vector<8x128xf32> -> vector<8x128xf32>
    %114 = vector.broadcast %4 : vector<1x128xf32> to vector<8x128xf32>
    %115 = arith.mulf %114, %108 : vector<8x128xf32>
    %116 = vector.broadcast %5 : vector<1x128xf32> to vector<8x128xf32>
    %117 = arith.addf %115, %116 : vector<8x128xf32>
    %118 = arith.index_cast %c5_i32 : i32 to index
    %c0_46 = arith.constant 0 : index
    %c0_47 = arith.constant 0 : index
    %119 = vector.load %arg1[%118, %c0_46, %c0_47] : memref<8x8x128xf32, #tpu.memory_space<vmem>>, vector<1x8x128xf32>
    %120 = vector.shape_cast %119 : vector<1x8x128xf32> to vector<8x128xf32>
    %121 = arith.addf %117, %120 : vector<8x128xf32>
    %cst_48 = arith.constant 0.000000e+00 : f32
    %cst_49 = arith.constant 1.000000e+00 : f32
    %122 = vector.broadcast %cst_48 : f32 to vector<8x128xf32>
    %123 = arith.maximumf %122, %108 : vector<8x128xf32>
    %124 = vector.broadcast %cst_49 : f32 to vector<8x128xf32>
    %125 = arith.minimumf %124, %123 : vector<8x128xf32>
    %126 = vector.broadcast %7 : vector<1x128xf32> to vector<8x128xf32>
    %127 = arith.subf %126, %113 : vector<8x128xf32>
    %128 = arith.mulf %125, %127 : vector<8x128xf32>
    %129 = arith.addf %121, %128 : vector<8x128xf32>
    %130 = arith.index_cast %c5_i32 : i32 to index
    %c0_50 = arith.constant 0 : index
    %c0_51 = arith.constant 0 : index
    %131 = vector.load %arg7[%130, %c0_50, %c0_51] : memref<8x8x128xf32, #tpu.memory_space<vmem>>, vector<1x8x128xf32>
    %132 = vector.shape_cast %131 : vector<1x8x128xf32> to vector<8x128xf32>
    %133 = vector.shape_cast %129 : vector<8x128xf32> to vector<1x8x128xf32>
    tpu.vector_store %arg7[%130, %c0_50, %c0_51], %133 {strides = array<i32>} : memref<8x8x128xf32, #tpu.memory_space<vmem>>, vector<1x8x128xf32>,
    %c6_i32 = arith.constant 6 : i32
    %cst_52 = arith.constant dense<0.000000e+00> : vector<8x128xf32>
    %134 = tpu.matmul %129, %6, %cst_52 {dimension_numbers = #tpu.dot_dimension_numbers<[1], [0], [0], [1], [0, 0, 1, 1], [], []>} : vector<8x128xf32>, vector<128x128xf32>, vector<8x128xf32> -> vector<8x128xf32>
    %135 = vector.broadcast %4 : vector<1x128xf32> to vector<8x128xf32>
    %136 = arith.mulf %135, %129 : vector<8x128xf32>
    %137 = vector.broadcast %5 : vector<1x128xf32> to vector<8x128xf32>
    %138 = arith.addf %136, %137 : vector<8x128xf32>
    %139 = arith.index_cast %c6_i32 : i32 to index
    %c0_53 = arith.constant 0 : index
    %c0_54 = arith.constant 0 : index
    %140 = vector.load %arg1[%139, %c0_53, %c0_54] : memref<8x8x128xf32, #tpu.memory_space<vmem>>, vector<1x8x128xf32>
    %141 = vector.shape_cast %140 : vector<1x8x128xf32> to vector<8x128xf32>
    %142 = arith.addf %138, %141 : vector<8x128xf32>
    %cst_55 = arith.constant 0.000000e+00 : f32
    %cst_56 = arith.constant 1.000000e+00 : f32
    %143 = vector.broadcast %cst_55 : f32 to vector<8x128xf32>
    %144 = arith.maximumf %143, %129 : vector<8x128xf32>
    %145 = vector.broadcast %cst_56 : f32 to vector<8x128xf32>
    %146 = arith.minimumf %145, %144 : vector<8x128xf32>
    %147 = vector.broadcast %7 : vector<1x128xf32> to vector<8x128xf32>
    %148 = arith.subf %147, %134 : vector<8x128xf32>
    %149 = arith.mulf %146, %148 : vector<8x128xf32>
    %150 = arith.addf %142, %149 : vector<8x128xf32>
    %151 = arith.index_cast %c6_i32 : i32 to index
    %c0_57 = arith.constant 0 : index
    %c0_58 = arith.constant 0 : index
    %152 = vector.load %arg7[%151, %c0_57, %c0_58] : memref<8x8x128xf32, #tpu.memory_space<vmem>>, vector<1x8x128xf32>
    %153 = vector.shape_cast %152 : vector<1x8x128xf32> to vector<8x128xf32>
    %154 = vector.shape_cast %150 : vector<8x128xf32> to vector<1x8x128xf32>
    tpu.vector_store %arg7[%151, %c0_57, %c0_58], %154 {strides = array<i32>} : memref<8x8x128xf32, #tpu.memory_space<vmem>>, vector<1x8x128xf32>,
    %c7_i32 = arith.constant 7 : i32
    %cst_59 = arith.constant dense<0.000000e+00> : vector<8x128xf32>
    %155 = tpu.matmul %150, %6, %cst_59 {dimension_numbers = #tpu.dot_dimension_numbers<[1], [0], [0], [1], [0, 0, 1, 1], [], []>} : vector<8x128xf32>, vector<128x128xf32>, vector<8x128xf32> -> vector<8x128xf32>
    %156 = vector.broadcast %4 : vector<1x128xf32> to vector<8x128xf32>
    %157 = arith.mulf %156, %150 : vector<8x128xf32>
    %158 = vector.broadcast %5 : vector<1x128xf32> to vector<8x128xf32>
    %159 = arith.addf %157, %158 : vector<8x128xf32>
    %160 = arith.index_cast %c7_i32 : i32 to index
    %c0_60 = arith.constant 0 : index
    %c0_61 = arith.constant 0 : index
    %161 = vector.load %arg1[%160, %c0_60, %c0_61] : memref<8x8x128xf32, #tpu.memory_space<vmem>>, vector<1x8x128xf32>
    %162 = vector.shape_cast %161 : vector<1x8x128xf32> to vector<8x128xf32>
    %163 = arith.addf %159, %162 : vector<8x128xf32>
    %cst_62 = arith.constant 0.000000e+00 : f32
    %cst_63 = arith.constant 1.000000e+00 : f32
    %164 = vector.broadcast %cst_62 : f32 to vector<8x128xf32>
    %165 = arith.maximumf %164, %150 : vector<8x128xf32>
    %166 = vector.broadcast %cst_63 : f32 to vector<8x128xf32>
    %167 = arith.minimumf %166, %165 : vector<8x128xf32>
    %168 = vector.broadcast %7 : vector<1x128xf32> to vector<8x128xf32>
    %169 = arith.subf %168, %155 : vector<8x128xf32>
    %170 = arith.mulf %167, %169 : vector<8x128xf32>
    %171 = arith.addf %163, %170 : vector<8x128xf32>
    %172 = arith.index_cast %c7_i32 : i32 to index
    %c0_64 = arith.constant 0 : index
    %c0_65 = arith.constant 0 : index
    %173 = vector.load %arg7[%172, %c0_64, %c0_65] : memref<8x8x128xf32, #tpu.memory_space<vmem>>, vector<1x8x128xf32>
    %174 = vector.shape_cast %173 : vector<1x8x128xf32> to vector<8x128xf32>
    %175 = vector.shape_cast %171 : vector<8x128xf32> to vector<1x8x128xf32>
    tpu.vector_store %arg7[%172, %c0_64, %c0_65], %175 {strides = array<i32>} : memref<8x8x128xf32, #tpu.memory_space<vmem>>, vector<1x8x128xf32>,
    %c8_i32 = arith.constant 8 : i32
    %c0_66 = arith.constant 0 : index
    %c0_67 = arith.constant 0 : index
    %176 = vector.load %arg8[%c0_66, %c0_67] : memref<8x128xf32, #tpu.memory_space<vmem>>, vector<8x128xf32>
    tpu.vector_store %arg8[%c0_66, %c0_67], %171 {strides = array<i32>} : memref<8x128xf32, #tpu.memory_space<vmem>>, vector<8x128xf32>,
    return
  }
  func.func @transform_0(%arg0: i32) -> (i32, i32, i32) {
    %c0_i32 = arith.constant 0 : i32
    %c0_i32_0 = arith.constant 0 : i32
    %c0_i32_1 = arith.constant 0 : i32
    return %arg0, %c0_i32, %c0_i32_0 : i32, i32, i32
  }
  func.func @transform_1(%arg0: i32) -> (i32, i32) {
    %c0_i32 = arith.constant 0 : i32
    %c0_i32_0 = arith.constant 0 : i32
    %c0_i32_1 = arith.constant 0 : i32
    return %c0_i32, %c0_i32_0 : i32, i32
  }
  func.func @transform_2(%arg0: i32) -> (i32, i32) {
    %c0_i32 = arith.constant 0 : i32
    %c0_i32_0 = arith.constant 0 : i32
    %c0_i32_1 = arith.constant 0 : i32
    return %c0_i32, %c0_i32_0 : i32, i32
  }
  func.func @transform_3(%arg0: i32) -> (i32, i32) {
    %c0_i32 = arith.constant 0 : i32
    %c0_i32_0 = arith.constant 0 : i32
    %c0_i32_1 = arith.constant 0 : i32
    return %c0_i32, %c0_i32_0 : i32, i32
  }
  func.func @transform_4(%arg0: i32) -> (i32, i32) {
    %c0_i32 = arith.constant 0 : i32
    %c0_i32_0 = arith.constant 0 : i32
    %c0_i32_1 = arith.constant 0 : i32
    return %c0_i32, %c0_i32_0 : i32, i32
  }
  func.func @transform_5(%arg0: i32) -> (i32, i32) {
    %c0_i32 = arith.constant 0 : i32
    %c0_i32_0 = arith.constant 0 : i32
    %c0_i32_1 = arith.constant 0 : i32
    return %c0_i32, %c0_i32_0 : i32, i32
  }
  func.func @transform_6(%arg0: i32) -> (i32, i32, i32) {
    %c0_i32 = arith.constant 0 : i32
    %c0_i32_0 = arith.constant 0 : i32
    %c0_i32_1 = arith.constant 0 : i32
    return %arg0, %c0_i32, %c0_i32_0 : i32, i32, i32
  }
}

</mosaic_0001>

<bundles_post_ra>
// kernel: tpu_custom_call.1
= control target key start
LH: loop header
LB: loop body
LE: loop exit
PB: predicated region body
PF: predicated region fallthrough
CT: control target
= control target key end

     0   :  { %s1388_s0 = inlined_call_operand.hbm [shape: f32[16,8,128], index: 0, kind: input, shape index: {}]   ;;  %s1389_s1 = inlined_call_operand.hbm [shape: f32[8,128], index: 1, kind: input, shape index: {}]   ;;  %s1390_s2 = inlined_call_operand.vmem [shape: f32[1,128], index: 2, kind: input, shape index: {}]   ;;  %s1391_s3 = inlined_call_operand.vmem [shape: f32[1,128], index: 3, kind: input, shape index: {}]   ;;  %s1392_s4 = inlined_call_operand.hbm [shape: f32[128,128], index: 4, kind: input, shape index: {}]   ;;  %s1393_s5 = inlined_call_operand.vmem [shape: f32[1,128], index: 5, kind: input, shape index: {}]   ;;  %s1394_s6 = inlined_call_operand.hbm [shape: f32[16,8,128], index: 6, kind: output, shape index: {}]  }
   0x1   :  { %1398 = sst [smem:[#allocation16_spill]] %s1389_s1 }
   0x2   :  { %1399 = sst [smem:[#allocation17_spill]] %s1392_s4 }
   0x3   :  { %11 = vsyncpa [#allocation4], 0 }
   0x4   :  { %13 = vsyncpa [#allocation4 + $0x1], 0 }
   0x5   :  { %14 = vsyncpa [#allocation7], 0 }
   0x6   :  { %15 = vsyncpa [#allocation5], 0 }
   0x7   :  { %17 = vsyncpa [#allocation5 + $0x1], 0  ;;  %s1015_s21 = smov 0   ;;  %s1017_s22 = smov 0  }
   0x8   :  { %s1019_s23 = smov 0   ;;  %s1021_s24 = smov 0  }
   0x9 LB: > { %1400 = sst [smem:[#allocation13_spill]] %s968_s23  ;;  %s1036_s25 = sadd.s32 4294967295, %s972_s24   ;;  %s972_s24 = sphi %s1021_s24, %s1413_s24   ;;  %s968_s23 = sphi %s1019_s23, %s1415_s23   ;;  %s964_s22 = sphi %s1017_s22, %s1417_s22   ;;  %s960_s21 = sphi %s1015_s21, %s1416_s21  }
   0xa   : > { %s703_s26 = sadd.s32 4294967294, %s972_s24   ;;  %s1040_s27 = sadd.s32 1, %s972_s24  }
   0xb   : > { %1401 = sst [smem:[#allocation14_spill]] %s1040_s27  ;;  %s30_s28 = sadd.s32 1, %s968_s23 }
   0xc   : > { %s27_s29 = ssub.s32 %s972_s24, %s1040_s27  ;;  %p37_p0 = scmp.ne.s32.totalorder %s968_s23, %s964_s22 }
   0xd   : > { %p28_p1 = scmp.eq.s32.totalorder %s27_s29, 0  ;;  %p38_p2 = scmp.eq.s32.totalorder %s972_s24, 0 }
   0xe   : > { %p43_p3 = scmp.ne.s32.totalorder %s964_s22, %s960_s21  ;;  %p44_p4 = scmp.eq.s32.totalorder %s1036_s25, 0 }
   0xf   : > { %s1052_s30 = scalar_select %p28_p1, %s968_s23, %s30_s28  }
  0x10   : > { %p1054_p5 = por %p38_p2, %p37_p0  ;;  %p1060_p6 = por %p44_p4, %p43_p3 }
  0x11   : > { %1402 = sst [smem:[#allocation15_spill]] %s1052_s30  ;;  %p172_p7 = scmp.eq.s32.totalorder %s1036_s25, 1 }
  0x12   : > { %p178_p8 = scmp.eq.s32.totalorder %s703_s26, 1  ;;  %p704_p9 = scmp.ge.s32.totalorder %s972_s24, 1 }
  0x13   : > { %p185_p10 = scmp.lt.s32.totalorder %s972_s24, 3  ;;  %p1067_p11 = por %p172_p7, %p37_p0 }
  0x14   : > { %p1071_p12 = por %p178_p8, %p43_p3  ;;  %s1408_s1 = sld [smem:[#allocation16_spill]] }
  0x15   : > { %p1075_p13 = pnand %p704_p9, %p185_p10  ;;  %s974_s15 = smov [#allocation6]  }
  0x16   : > { %s199_s16 = sshll.u32 %s974_s15, 4  ;;  %p767_p7 = scmp.lt.s32.totalorder %s972_s24, 2  ;;  %s200_s16 = int_to_ptr.vmem [resolvable:$true] %s199_s16 }
  0x17   : > { %p750_p0 = pneg %p1075_p13  ;;  %s1409_s4 = sld [smem:[#allocation17_spill]] }
  0x18   : > { %p1094_p8 = pnand %p767_p7, %p1054_p5  ;;  %s975_s26 = smov [#allocation8]  }
  0x19   : > { %p751_p3 = pnand %p750_p0, %p44_p4  ;;  %s216_s28 = sshll.u32 %s975_s26, 4  ;;  %s217_s28 = int_to_ptr.vmem [resolvable:$true] %s216_s28 }
  0x1a   : > { %s197_s14 = sshll.u32 %s1408_s1, 4  ;;  %s233_s29 = sand.u32 1, %s968_s23   ;;  %s198_s14 = int_to_ptr.hbm [resolvable:$true] %s197_s14 }
  0x1b   : > { %753 = dma.hbm_to_vmem [thread:$0]  (!%p751_p3), %s198_s14, 128, %s200_s16, [#allocation7]  }
  0x1c   : > { %s976_s12 = smov 128   ;;  %s977_s13 = smov 8  }
  0x1d   : > { %s214_s19 = sshll.u32 %s1409_s4, 4  ;;  %s708_s15 = sshll.u32 %s233_s29, 6  ;;  %s215_s19 = int_to_ptr.hbm [resolvable:$true] %s214_s19 }
  0x1e   : > { %756 = dma.hbm_to_vmem [thread:$0]  (!%p751_p3), %s215_s19, 2048, %s217_s28, [#allocation7], %s976_s12, %s976_s12, %s977_s13  }
  0x1f   : > { %s736_s1 = sshll.u32 %s972_s24, 6  ;;  %s237_s14 = scalar_lea.vmem [#allocation3], %s708_s15 }
  0x20   : > { %s242_s18 = scalar_lea.hbm %s1388_s0, %s736_s1  ;;  %s245_s7 = sshll.u32 %s237_s14, 4  ;;  %s246_s7 = int_to_ptr.vmem [resolvable:$true] %s245_s7 }
  0x21   : > { %s243_s16 = sshll.u32 %s242_s18, 4  ;;  %s234_s4 = scalar_lea.sflag [#allocation4], %s233_s29  ;;  %s244_s16 = int_to_ptr.hbm [resolvable:$true] %s243_s16 }
  0x22   : > { %s872_s27 = sshra.s32 %s244_s16, 4  ;;  %p876_p9 = pneg %p1094_p8  ;;  %s873_s27 = int_to_ptr.hbm [resolvable:$true] %s872_s27 }
  0x23   : > { %s874_s26 = scalar_lea.hbm %s873_s27, 64  ;;  %s879_s23 = scalar_lea.hbm %s1388_s0, 128 }
  0x24   : > { %p875_p5 = scmp.ne.s32.totalorder %s873_s27, %s874_s26  ;;  %p880_p3 = scmp.lt.s32.totalorder %s873_s27, %s1388_s0 }
  0x25   : > { %p881_p7 = scmp.lt.s32.totalorder %s879_s23, %s874_s26 }
  0x26   : > { %p877_p10 = pnand %p876_p9, %p875_p5 }
  0x27   : > { %p882_p2 = por %p881_p7, %p880_p3 }
  0x28   : > { %p878_p0 = pneg %p877_p10 }
  0x2a   : > { %p883_p1 = pnand %p882_p2, %p878_p0 }
  0x2c   : > { %886 = shalt.err (!%p883_p1)
}
  0x2d   : > { %760 = dma.hbm_to_vmem [thread:$0]  (!%p1094_p8), %s244_s16, 1024, %s246_s7, %s234_s4, %s976_s12, %s976_s12, %s977_s13  }
  0x2e   : > { %257 = sbr.rel (%p1075_p13) target bundleno = 1180 (0x49c), region = 44  ;;  %s1116_s29 = sand.u32 (!%p1075_p13), 1, %s964_s22  }
  0x2f   : > { %s712_s15 = sshll.u32 (!%p1075_p13), %s1116_s29, 6  ;;  %s260_s17 = scalar_lea.sflag (!%p1075_p13), [#allocation4], %s1116_s29 }
  0x30   : > { %s1120_s18 = scalar_lea.vmem (!%p1075_p13), [#allocation3], %s712_s15 }
  0x33   : > { %947 = dma.done.wait (%p1060_p6), %s260_s17, 1024  }
  0x34   : > { %949 = vsyncadd (%p1060_p6), %s260_s17, 4294966272 }
  0x35   : > { %951 = dma.done.wait (%p44_p4), [#allocation7], 2176  }
  0x36   : > { %953 = vsyncadd (%p44_p4), [#allocation7], 4294965120  ;;  %s1130_s4 = scalar_lea.vmem [#allocation9], %s712_s15  ;;  %p1411_p13 = scmp.ne.s32.totalorder %s1036_s25, 0 }
  0x38   : > { %308 = sbr.rel (%p1411_p13) target bundleno = 63 (0x3f), region = 60 }
  0x3d   : > { %v309_v0 = vld [vmem:[#allocation6] sm:$0xff] }
  0x3e   : > { %310 = vst [vmem:[#allocation2] sm:$0xff] %v309_v0 }
  0x3f PF: > { %v1134_v1 = vld [vmem:[#allocation8 + $0x78] sm:$0xff]  ;;  %v1136_v2 = vld [vmem:[#allocation8 + $0x70] sm:$0xff]  ;;  %v1140_v3 = vld [vmem:[#allocation8 + $0x68] sm:$0xff]  ;;  %s737_s13 = sshll.u32 %s1036_s25, 6  ;;  %s608_s26 = sshll.u32 %s1130_s4, 4  ;;  %s609_s26 = int_to_ptr.vmem [resolvable:$true] %s608_s26 }
  0x40   : > { %331 = vmatpush.msra.mxu0 %v1134_v1  ;;  %370 = vmatpush.msra.mxu1 %v1134_v1  ;;  %v1146_v4 = vld [vmem:[#allocation8 + $0x60] sm:$0xff]  ;;  %v1152_v5 = vld [vmem:[#allocation8 + $0x58] sm:$0xff]  ;;  %v1158_v6 = vld [vmem:[#allocation8 + $0x50] sm:$0xff]  ;;  %s607_s16 = scalar_lea.hbm %s1394_s6, %s737_s13  ;;  %s596_s25 = scalar_lea.sflag [#allocation5], %s1116_s29 }
  0x41   : > { %402 = vmatpush.msra.mxu2 %v1134_v1  ;;  %434 = vmatpush.msra.mxu3 %v1134_v1  ;;  %v1164_v7 = vld [vmem:[#allocation8 + $0x48] sm:$0xff]  ;;  %v1170_v8 = vld [vmem:[#allocation8 + $0x40] sm:$0xff]  ;;  %v1176_v9 = vld [vmem:[#allocation8 + $0x38] sm:$0xff]  ;;  %s610_s19 = sshll.u32 %s607_s16, 4  ;;  %s922_s17 = scalar_lea.hbm %s1394_s6, 128  ;;  %s611_s19 = int_to_ptr.hbm [resolvable:$true] %s610_s19 }
  0x42   : > { %332 = vmatpush.msra.mxu0 %v1136_v2  ;;  %371 = vmatpush.msra.mxu1 %v1136_v2  ;;  %v1182_v10 = vld [vmem:[#allocation8 + $0x30] sm:$0xff]  ;;  %v1188_v11 = vld [vmem:[#allocation8 + $0x28] sm:$0xff]  ;;  %v1194_v12 = vld [vmem:[#allocation8 + $0x20] sm:$0xff]  ;;  %s916_s28 = sshra.s32 %s611_s19, 4  ;;  %s917_s28 = int_to_ptr.hbm [resolvable:$true] %s916_s28 }
  0x43   : > { %403 = vmatpush.msra.mxu2 %v1136_v2  ;;  %435 = vmatpush.msra.mxu3 %v1136_v2  ;;  %v1200_v13 = vld [vmem:[#allocation8 + $0x18] sm:$0xff]  ;;  %v1206_v14 = vld [vmem:[#allocation8 + $0x10] sm:$0xff]  ;;  %v1212_v15 = vld [vmem:[#allocation8 + $0x8] sm:$0xff]  ;;  %s918_s30 = scalar_lea.hbm %s917_s28, 64  ;;  %p923_p2 = scmp.lt.s32.totalorder %s917_s28, %s1394_s6 }
  0x44   : > { %333 = vmatpush.msra.mxu0 %v1140_v3  ;;  %372 = vmatpush.msra.mxu1 %v1140_v3  ;;  %v1218_v16 = vld [vmem:[#allocation8] sm:$0xff]  ;;  %v1300_v18 = vld [vmem:[%s1390_s2] ss:$0 sm:$0xff]  ;;  %v359_v24 = vld [vmem:[%s1120_s18] sm:$0xff]  ;;  %p919_p4 = scmp.ne.s32.totalorder %s917_s28, %s918_s30  ;;  %p924_p8 = scmp.lt.s32.totalorder %s922_s17, %s918_s30 }
  0x45   : > { %404 = vmatpush.msra.mxu2 %v1140_v3  ;;  %436 = vmatpush.msra.mxu3 %v1140_v3  ;;  %v1223_v17 = vld [vmem:[#allocation2] sm:$0xff]  ;;  %v717_v35 = vld [vmem:[%s1120_s18 + $0x8] sm:$0xff]  ;;  %v719_v45 = vld [vmem:[%s1120_s18 + $0x10] sm:$0xff] }
  0x46   : > { %334 = vmatpush.msra.mxu0 %v1146_v4  ;;  %373 = vmatpush.msra.mxu1 %v1146_v4  ;;  %v354_v19 = vmul.f32 %v1300_v18, %v1223_v17  ;;  %v1307_v20 = vld [vmem:[%s1391_s3] ss:$0 sm:$0xff]  ;;  %v361_v21 = vmax.f32 %v1223_v17, 0.0  ;;  %p920_p6 = pnand %p919_p4, %p1067_p11  ;;  %p925_p5 = por %p924_p8, %p923_p2 }
  0x47   : > { %405 = vmatpush.msra.mxu2 %v1146_v4  ;;  %437 = vmatpush.msra.mxu3 %v1146_v4  ;;  %v1314_v23 = vld [vmem:[%s1393_s5] ss:$0 sm:$0xff] }
  0x48   : > { %335 = vmatpush.msra.mxu0 %v1152_v5  ;;  %374 = vmatpush.msra.mxu1 %v1152_v5  ;;  %v358_v22 = vadd.f32 %v1307_v20, %v354_v19  ;;  %v362_v25 = vmin.f32 %v361_v21, 1.0  ;;  %v721_v55 = vld [vmem:[%s1120_s18 + $0x18] sm:$0xff]  ;;  %p921_p1 = pneg %p920_p6 }
  0x49   : > { %406 = vmatpush.msra.mxu2 %v1152_v5  ;;  %438 = vmatpush.msra.mxu3 %v1152_v5 }
  0x4a   : > { %336 = vmatpush.msra.mxu0 %v1158_v6  ;;  %375 = vmatpush.msra.mxu1 %v1158_v6  ;;  %v360_v27 = vadd.f32 %v359_v24, %v358_v22  ;;  %v727_v24 = vld [vmem:[%s1120_s18 + $0x30] sm:$0xff]  ;;  %p926_p9 = pnand %p925_p5, %p921_p1 }
  0x4b   : > { %407 = vmatpush.msra.mxu2 %v1158_v6  ;;  %439 = vmatpush.msra.mxu3 %v1158_v6 }
  0x4c   : > { %337 = vmatpush.msra.mxu0 %v1164_v7  ;;  %376 = vmatpush.msra.mxu1 %v1164_v7 }
  0x4d   : > { %408 = vmatpush.msra.mxu2 %v1164_v7  ;;  %440 = vmatpush.msra.mxu3 %v1164_v7 }
  0x4e   : > { %338 = vmatpush.msra.mxu0 %v1170_v8  ;;  %377 = vmatpush.msra.mxu1 %v1170_v8 }
  0x4f   : > { %409 = vmatpush.msra.mxu2 %v1170_v8  ;;  %441 = vmatpush.msra.mxu3 %v1170_v8 }
  0x50   : > { %339 = vmatpush.msra.mxu0 %v1176_v9  ;;  %378 = vmatpush.msra.mxu1 %v1176_v9 }
  0x51   : > { %410 = vmatpush.msra.mxu2 %v1176_v9  ;;  %442 = vmatpush.msra.mxu3 %v1176_v9 }
  0x52   : > { %340 = vmatpush.msra.mxu0 %v1182_v10  ;;  %379 = vmatpush.msra.mxu1 %v1182_v10 }
  0x53   : > { %411 = vmatpush.msra.mxu2 %v1182_v10  ;;  %443 = vmatpush.msra.mxu3 %v1182_v10 }
  0x54   : > { %341 = vmatpush.msra.mxu0 %v1188_v11  ;;  %380 = vmatpush.msra.mxu1 %v1188_v11 }
  0x55   : > { %412 = vmatpush.msra.mxu2 %v1188_v11  ;;  %444 = vmatpush.msra.mxu3 %v1188_v11 }
  0x56   : > { %342 = vmatpush.msra.mxu0 %v1194_v12  ;;  %381 = vmatpush.msra.mxu1 %v1194_v12 }
  0x57   : > { %413 = vmatpush.msra.mxu2 %v1194_v12  ;;  %445 = vmatpush.msra.mxu3 %v1194_v12 }
  0x58   : > { %343 = vmatpush.msra.mxu0 %v1200_v13  ;;  %382 = vmatpush.msra.mxu1 %v1200_v13 }
  0x59   : > { %414 = vmatpush.msra.mxu2 %v1200_v13  ;;  %446 = vmatpush.msra.mxu3 %v1200_v13 }
  0x5a   : > { %344 = vmatpush.msra.mxu0 %v1206_v14  ;;  %383 = vmatpush.msra.mxu1 %v1206_v14 }
  0x5b   : > { %415 = vmatpush.msra.mxu2 %v1206_v14  ;;  %447 = vmatpush.msra.mxu3 %v1206_v14 }
  0x5c   : > { %345 = vmatpush.msra.mxu0 %v1212_v15  ;;  %384 = vmatpush.msra.mxu1 %v1212_v15 }
  0x5d   : > { %416 = vmatpush.msra.mxu2 %v1212_v15  ;;  %448 = vmatpush.msra.mxu3 %v1212_v15 }
  0x5e   : > { %346 = vmatpush.msra.mxu0 %v1218_v16  ;;  %385 = vmatpush.msra.mxu1 %v1218_v16 }
  0x5f   : > { %347 = vmatmul.f32.vlgmr.msra.gmra.mxu0 %v1223_v17  ;;  %417 = vmatpush.msra.mxu2 %v1218_v16 }
  0x60   : > { %449 = vmatpush.msra.mxu3 %v1218_v16  ;;  %466 = vmatpush.msrb.mxu0 %v1134_v1 }
  0x61   : > { %498 = vmatpush.msrb.mxu1 %v1134_v1  ;;  %530 = vmatpush.msrb.mxu2 %v1134_v1 }
  0x62   : > { %467 = vmatpush.msrb.mxu0 %v1136_v2  ;;  %562 = vmatpush.msrb.mxu3 %v1134_v1  ;;  %v723_v1 = vld [vmem:[%s1120_s18 + $0x20] sm:$0xff] }
  0x63   : > { %499 = vmatpush.msrb.mxu1 %v1136_v2  ;;  %531 = vmatpush.msrb.mxu2 %v1136_v2 }
  0x64   : > { %468 = vmatpush.msrb.mxu0 %v1140_v3  ;;  %563 = vmatpush.msrb.mxu3 %v1136_v2 }
  0x65   : > { %500 = vmatpush.msrb.mxu1 %v1140_v3  ;;  %532 = vmatpush.msrb.mxu2 %v1140_v3 }
  0x66   : > { %469 = vmatpush.msrb.mxu0 %v1146_v4  ;;  %564 = vmatpush.msrb.mxu3 %v1140_v3 }
  0x67   : > { %501 = vmatpush.msrb.mxu1 %v1146_v4  ;;  %533 = vmatpush.msrb.mxu2 %v1146_v4 }
  0x68   : > { %470 = vmatpush.msrb.mxu0 %v1152_v5  ;;  %565 = vmatpush.msrb.mxu3 %v1146_v4 }
  0x69   : > { %502 = vmatpush.msrb.mxu1 %v1152_v5  ;;  %534 = vmatpush.msrb.mxu2 %v1152_v5 }
  0x6a   : > { %471 = vmatpush.msrb.mxu0 %v1158_v6  ;;  %566 = vmatpush.msrb.mxu3 %v1152_v5 }
  0x6b   : > { %503 = vmatpush.msrb.mxu1 %v1158_v6  ;;  %535 = vmatpush.msrb.mxu2 %v1158_v6 }
  0x6c   : > { %472 = vmatpush.msrb.mxu0 %v1164_v7  ;;  %567 = vmatpush.msrb.mxu3 %v1158_v6 }
  0x6d   : > { %504 = vmatpush.msrb.mxu1 %v1164_v7  ;;  %536 = vmatpush.msrb.mxu2 %v1164_v7 }
  0x6e   : > { %473 = vmatpush.msrb.mxu0 %v1170_v8  ;;  %568 = vmatpush.msrb.mxu3 %v1164_v7 }
  0x6f   : > { %505 = vmatpush.msrb.mxu1 %v1170_v8  ;;  %537 = vmatpush.msrb.mxu2 %v1170_v8 }
  0x70   : > { %474 = vmatpush.msrb.mxu0 %v1176_v9  ;;  %569 = vmatpush.msrb.mxu3 %v1170_v8 }
  0x71   : > { %506 = vmatpush.msrb.mxu1 %v1176_v9  ;;  %538 = vmatpush.msrb.mxu2 %v1176_v9 }
  0x72   : > { %475 = vmatpush.msrb.mxu0 %v1182_v10  ;;  %570 = vmatpush.msrb.mxu3 %v1176_v9 }
  0x73   : > { %507 = vmatpush.msrb.mxu1 %v1182_v10  ;;  %539 = vmatpush.msrb.mxu2 %v1182_v10 }
  0x74   : > { %476 = vmatpush.msrb.mxu0 %v1188_v11  ;;  %571 = vmatpush.msrb.mxu3 %v1182_v10 }
  0x75   : > { %508 = vmatpush.msrb.mxu1 %v1188_v11  ;;  %540 = vmatpush.msrb.mxu2 %v1188_v11 }
  0x76   : > { %477 = vmatpush.msrb.mxu0 %v1194_v12  ;;  %572 = vmatpush.msrb.mxu3 %v1188_v11  ;;  %v725_v11 = vld [vmem:[%s1120_s18 + $0x28] sm:$0xff] }
  0x77   : > { %509 = vmatpush.msrb.mxu1 %v1194_v12  ;;  %541 = vmatpush.msrb.mxu2 %v1194_v12 }
  0x78   : > { %478 = vmatpush.msrb.mxu0 %v1200_v13  ;;  %573 = vmatpush.msrb.mxu3 %v1194_v12 }
  0x79   : > { %510 = vmatpush.msrb.mxu1 %v1200_v13  ;;  %542 = vmatpush.msrb.mxu2 %v1200_v13 }
  0x7a   : > { %479 = vmatpush.msrb.mxu0 %v1206_v14  ;;  %574 = vmatpush.msrb.mxu3 %v1200_v13 }
  0x7b   : > { %511 = vmatpush.msrb.mxu1 %v1206_v14  ;;  %543 = vmatpush.msrb.mxu2 %v1206_v14 }
  0x7c   : > { %480 = vmatpush.msrb.mxu0 %v1212_v15  ;;  %575 = vmatpush.msrb.mxu3 %v1206_v14 }
  0x7d   : > { %512 = vmatpush.msrb.mxu1 %v1212_v15  ;;  %544 = vmatpush.msrb.mxu2 %v1212_v15 }
  0x7e   : > { %481 = vmatpush.msrb.mxu0 %v1218_v16  ;;  %576 = vmatpush.msrb.mxu3 %v1212_v15 }
  0x7f   : > { %513 = vmatpush.msrb.mxu1 %v1218_v16  ;;  %545 = vmatpush.msrb.mxu2 %v1218_v16 }
  0x80   : > { %577 = vmatpush.msrb.mxu3 %v1218_v16 }
  0xdc   : > { %v348_v26 = vpop.f32.mrf.mxu0 }
  0xdd   : > { %v366_v28 = vsub.f32 %v1314_v23, %v348_v26 }
  0xdf   : > { %v367_v29 = vmul.f32 %v366_v28, %v362_v25 }
  0xe1   : > { %v368_v30 = vadd.f32 %v367_v29, %v360_v27 }
  0xe3   : > { %369 = vst [vmem:[%s1130_s4] sm:$0xff] %v368_v30  ;;  %386 = vmatmul.f32.vlgmr.msra.gmra.mxu1 %v368_v30  ;;  %v390_v31 = vmul.f32 %v1300_v18, %v368_v30  ;;  %v395_v32 = vmax.f32 %v368_v30, 0.0 }
  0xe5   : > { %v391_v33 = vadd.f32 %v1307_v20, %v390_v31  ;;  %v396_v36 = vmin.f32 %v395_v32, 1.0 }
  0xe7   : > { %v394_v38 = vadd.f32 %v717_v35, %v391_v33 }
 0x160   : > { %v387_v34 = vpop.f32.mrf.mxu1 }
 0x161   : > { %v397_v37 = vsub.f32 %v1314_v23, %v387_v34  ;;  %v729_v34 = vld [vmem:[%s1120_s18 + $0x38] sm:$0xff] }
 0x163   : > { %v398_v39 = vmul.f32 %v397_v37, %v396_v36 }
 0x165   : > { %v399_v40 = vadd.f32 %v398_v39, %v394_v38 }
 0x167   : > { %718 = vst [vmem:[%s1130_s4 + $0x8] sm:$0xff] %v399_v40  ;;  %418 = vmatmul.f32.vlgmr.msra.gmra.mxu2 %v399_v40  ;;  %v422_v41 = vmul.f32 %v1300_v18, %v399_v40  ;;  %v427_v42 = vmax.f32 %v399_v40, 0.0 }
 0x169   : > { %v423_v43 = vadd.f32 %v1307_v20, %v422_v41  ;;  %v428_v46 = vmin.f32 %v427_v42, 1.0 }
 0x16b   : > { %v426_v48 = vadd.f32 %v719_v45, %v423_v43 }
 0x1ea   : > { %v419_v44 = vpop.f32.mrf.mxu2 }
 0x1eb   : > { %v429_v47 = vsub.f32 %v1314_v23, %v419_v44 }
 0x1ed   : > { %v430_v49 = vmul.f32 %v429_v47, %v428_v46 }
 0x1ef   : > { %v431_v50 = vadd.f32 %v430_v49, %v426_v48 }
 0x1f1   : > { %720 = vst [vmem:[%s1130_s4 + $0x10] sm:$0xff] %v431_v50  ;;  %450 = vmatmul.f32.vlgmr.msra.gmra.mxu3 %v431_v50  ;;  %v454_v51 = vmul.f32 %v1300_v18, %v431_v50  ;;  %v459_v52 = vmax.f32 %v431_v50, 0.0 }
 0x1f3   : > { %v455_v53 = vadd.f32 %v1307_v20, %v454_v51  ;;  %v460_v56 = vmin.f32 %v459_v52, 1.0 }
 0x1f5   : > { %v458_v58 = vadd.f32 %v721_v55, %v455_v53 }
 0x274   : > { %v451_v54 = vpop.f32.mrf.mxu3 }
 0x275   : > { %v461_v57 = vsub.f32 %v1314_v23, %v451_v54 }
 0x277   : > { %v462_v59 = vmul.f32 %v461_v57, %v460_v56 }
 0x279   : > { %v463_v60 = vadd.f32 %v462_v59, %v458_v58 }
 0x27b   : > { %722 = vst [vmem:[%s1130_s4 + $0x18] sm:$0xff] %v463_v60  ;;  %482 = vmatmul.f32.vlgmr.msrb.gmra.mxu0 %v463_v60  ;;  %v486_v61 = vmul.f32 %v1300_v18, %v463_v60  ;;  %v491_v62 = vmax.f32 %v463_v60, 0.0 }
 0x27d   : > { %v487_v63 = vadd.f32 %v1307_v20, %v486_v61  ;;  %v492_v2 = vmin.f32 %v491_v62, 1.0 }
 0x27f   : > { %v490_v4 = vadd.f32 %v723_v1, %v487_v63 }
 0x2f8   : > { %v483_v0 = vpop.f32.mrf.mxu0 }
 0x2f9   : > { %v493_v3 = vsub.f32 %v1314_v23, %v483_v0 }
 0x2fb   : > { %v494_v5 = vmul.f32 %v493_v3, %v492_v2 }
 0x2fd   : > { %v495_v6 = vadd.f32 %v494_v5, %v490_v4 }
 0x2ff   : > { %724 = vst [vmem:[%s1130_s4 + $0x20] sm:$0xff] %v495_v6  ;;  %514 = vmatmul.f32.vlgmr.msrb.gmra.mxu1 %v495_v6  ;;  %v518_v7 = vmul.f32 %v1300_v18, %v495_v6  ;;  %v523_v8 = vmax.f32 %v495_v6, 0.0 }
 0x301   : > { %v519_v9 = vadd.f32 %v1307_v20, %v518_v7  ;;  %v524_v12 = vmin.f32 %v523_v8, 1.0 }
 0x303   : > { %v522_v14 = vadd.f32 %v725_v11, %v519_v9 }
 0x37c   : > { %v515_v10 = vpop.f32.mrf.mxu1 }
 0x37d   : > { %v525_v13 = vsub.f32 %v1314_v23, %v515_v10 }
 0x37f   : > { %v526_v15 = vmul.f32 %v525_v13, %v524_v12 }
 0x381   : > { %v527_v16 = vadd.f32 %v526_v15, %v522_v14 }
 0x383   : > { %726 = vst [vmem:[%s1130_s4 + $0x28] sm:$0xff] %v527_v16  ;;  %546 = vmatmul.f32.vlgmr.msrb.gmra.mxu2 %v527_v16  ;;  %v550_v17 = vmul.f32 %v1300_v18, %v527_v16  ;;  %v555_v19 = vmax.f32 %v527_v16, 0.0 }
 0x385   : > { %v551_v21 = vadd.f32 %v1307_v20, %v550_v17  ;;  %v556_v25 = vmin.f32 %v555_v19, 1.0 }
 0x387   : > { %v554_v27 = vadd.f32 %v727_v24, %v551_v21 }
 0x406   : > { %v547_v22 = vpop.f32.mrf.mxu2 }
 0x407   : > { %v557_v26 = vsub.f32 %v1314_v23, %v547_v22 }
 0x409   : > { %v558_v28 = vmul.f32 %v557_v26, %v556_v25 }
 0x40b   : > { %v559_v29 = vadd.f32 %v558_v28, %v554_v27 }
 0x40d   : > { %728 = vst [vmem:[%s1130_s4 + $0x30] sm:$0xff] %v559_v29  ;;  %578 = vmatmul.f32.vlgmr.msrb.gmra.mxu3 %v559_v29  ;;  %v582_v30 = vmul.f32 %v1300_v18, %v559_v29  ;;  %v587_v31 = vmax.f32 %v559_v29, 0.0 }
 0x40f   : > { %v583_v32 = vadd.f32 %v1307_v20, %v582_v30  ;;  %v588_v35 = vmin.f32 %v587_v31, 1.0 }
 0x411   : > { %v586_v37 = vadd.f32 %v729_v34, %v583_v32 }
 0x490   : > { %v579_v33 = vpop.f32.mrf.mxu3 }
 0x491   : > { %v589_v36 = vsub.f32 %v1314_v23, %v579_v33 }
 0x493   : > { %v590_v18 = vmul.f32 %v589_v36, %v588_v35 }
 0x495   : > { %v591_v38 = vadd.f32 %v590_v18, %v586_v37 }
 0x497   : > { %730 = vst [vmem:[%s1130_s4 + $0x38] sm:$0xff] %v591_v38 }
 0x498   : > { %594 = vst [vmem:[#allocation2] sm:$0xff] %v591_v38 }
 0x499   : > { %929 = shalt.err (!%p926_p9)
}
 0x49a   : > { %s978_s29 = smov 128   ;;  %s979_s4 = smov 8  }
 0x49b   : > { %748 = dma.vmem_to_hbm [thread:$0]  (%p1067_p11), %s609_s26, 1024, %s611_s19, %s596_s25, %s978_s29, %s978_s29, %s979_s4  }
 0x49c PF: > { %s625_s27 = sand.u32 1, %s960_s21   ;;  %p1412_p10 = scmp.ge.s32.totalorder %s972_s24, 2 }
 0x49d   : > { %s626_s8 = scalar_lea.sflag [#allocation5], %s625_s27 }
 0x49e   : > { %p762_p0 = pnand %p1412_p10, %p1071_p12 }
 0x4a0   : > { %p763_p3 = pneg %p762_p0 }
 0x4a2   : > { %955 = dma.done.wait (%p763_p3), %s626_s8, 1024  }
 0x4a3   : > { %957 = vsyncadd (%p763_p3), %s626_s8, 4294966272  ;;  %s1413_s24 = sld [smem:[#allocation14_spill]]  ;;  %s1416_s21 = smov %s964_s22 }
 0x4a4   : > { %s1414_s11 = sld [smem:[#allocation13_spill]] }
 0x4a5   : > { %s1415_s23 = sld [smem:[#allocation15_spill]] }
 0x4a9   : > { %p20_p7 = scmp.ge.s32.totalorder %s1413_s24, 4  }
 0x4aa   : > { %s1417_s22 = smov %s1414_s11 }
 0x4ab   :  { %22 = sbr.rel (!%p20_p7) target bundleno = 9 (0x9), region = 115 }
 0x4b0   :  { %632 = vsyncpa [#allocation4], 1 }
 0x4b1   :  { %634 = vsyncpa [#allocation4 + $0x1], 1 }
 0x4b2   :  { %635 = vsyncpa [#allocation7], 1 }
 0x4b3   :  { %636 = vsyncpa [#allocation5], 1 }
 0x4b4   :  { %638 = vsyncpa [#allocation5 + $0x1], 1 }

</bundles_post_ra>
